<compile_context>
chip_gen: v7x
topology: tpu7x:2x2x1
jax: 0.10.0
libtpu: 0.0.40
codegen_flags: <defaults>
</compile_context>

<pallas_src>
import functools

import jax
import jax.numpy as jnp
from jax.experimental import pallas as pl
from jax.experimental.pallas import tpu as pltpu

NUM_CLASSES = 10
PAD_CLASSES = 128          # lane-dense padded width for the fc2 output


def _projection_head_kernel(x_ref, w1_ref, b1_ref, w2_ref, b2_ref,
                            outct_ref, out_ref, acc_ref, *,
                            inv_hw, n_chan, pack):
    step = pl.program_id(0)

    @pl.when(step == 0)
    def _():
        acc_ref[...] = jnp.zeros_like(acc_ref)

    # Partial spatial sum for this chunk: (N, TH, C*pack) -> (N, C*pack).
    acc_ref[...] += jnp.sum(x_ref[...], axis=1)

    @pl.when(step == pl.num_programs(0) - 1)
    def _():
        # Fold the lane-packed spatial copies back to C channels (statically
        # unrolled, runs once), then scale to the global mean.
        pooled = acc_ref[:, 0:n_chan]
        for p in range(1, pack):
            pooled = pooled + acc_ref[:, p * n_chan:(p + 1) * n_chan]
        pooled = pooled * inv_hw                                  # (N, C)

        h = jnp.dot(pooled, w1_ref[...],
                    preferred_element_type=jnp.float32) + b1_ref[...]
        outct_ref[...] = h                                        # fc1, pre-ReLU
        y = jnp.maximum(h, 0.0)
        out_ref[...] = jnp.dot(y, w2_ref[...],
                               preferred_element_type=jnp.float32) + b2_ref[...]


def projection_head_pallas(x_nchw, params):
    """x_nchw: (N, C, H, W) float32. Returns (out_ct (N,128), out (N,10))."""
    N, C, H, W = x_nchw.shape
    HW = H * W
    x = jnp.transpose(x_nchw, (0, 2, 3, 1)).reshape(N, HW, C)

    # Pack spatial rows so the input block's last dim fills all 128 lanes.
    pack = 1
    if 128 % C == 0 and (128 // C) > 1 and HW % (128 // C) == 0:
        pack = 128 // C
    Cp = C * pack
    rows = HW // pack
    x = x.reshape(N, rows, Cp)       # contiguous view, no data movement

    # Largest 8-aligned spatial tile that still leaves >=2 grid steps so the
    # pooling DMA is pipelined; fall back to a single full-extent step.
    th = rows
    for cand in (2048, 1024, 512, 256, 128, 64, 32, 16, 8):
        if rows % cand == 0 and rows // cand >= 2:
            th = cand
            break
    grid = (rows // th,)

    w1, b1 = params["w1"], params["b1"]          # (C, hidden), (1, hidden)
    w2p, b2p = params["w2p"], params["b2p"]      # (hidden, 128), (1, 128)
    hidden = w1.shape[1]

    def full_spec(shape):
        nd = len(shape)
        return pl.BlockSpec(shape, lambda i, _nd=nd: (0,) * _nd)

    flops = N * HW * C + 2 * N * (C * hidden + hidden * PAD_CLASSES)
    bytes_accessed = 4 * (x.size + w1.size + b1.size + w2p.size + b2p.size
                          + N * hidden + N * PAD_CLASSES)

    out_ct, out_pad = pl.pallas_call(
        functools.partial(_projection_head_kernel,
                          inv_hw=1.0 / HW, n_chan=C, pack=pack),
        out_shape=(jax.ShapeDtypeStruct((N, hidden), jnp.float32),
                   jax.ShapeDtypeStruct((N, PAD_CLASSES), jnp.float32)),
        grid_spec=pltpu.PrefetchScalarGridSpec(
            num_scalar_prefetch=0,
            grid=grid,
            in_specs=[
                pl.BlockSpec((N, th, Cp), lambda i: (0, i, 0)),
                full_spec(w1.shape), full_spec(b1.shape),
                full_spec(w2p.shape), full_spec(b2p.shape),
            ],
            out_specs=(pl.BlockSpec((N, hidden), lambda i: (0, 0)),
                       pl.BlockSpec((N, PAD_CLASSES), lambda i: (0, 0))),
            scratch_shapes=[pltpu.VMEM((N, Cp), jnp.float32)],
        ),
        compiler_params=pltpu.CompilerParams(
            dimension_semantics=("arbitrary",),          # reduction axis
            vmem_limit_bytes=32 * 1024 * 1024),          # v7x-safe budget
        cost_estimate=pl.CostEstimate(flops=flops, transcendentals=0,
                                      bytes_accessed=bytes_accessed),
    )(x, w1, b1, w2p, b2p)

    return out_ct, out_pad[:, :NUM_CLASSES]


def projection_head_ref(x_nchw, raw):
    """Pure-JAX reference with PyTorch-layout weights."""
    pooled = jnp.mean(x_nchw, axis=(2, 3))                       # (N, 64)
    out_ct = pooled @ raw["W1"].T + raw["b1"]
    out = jnp.maximum(out_ct, 0.0) @ raw["W2"].T + raw["b2"]
    return out_ct, out


if __name__ == "__main__":
    key = jax.random.PRNGKey(0)
    kx, k1, k2, k3, k4 = jax.random.split(key, 5)

    # fc is Linear(64, 128) => the flattened pooled feature must be 64 channels.
    N, C, H, W = 2, 64, 16, 16
    x = jax.random.normal(kx, (N, C, H, W), jnp.float32)

    # PyTorch-layout parameters (fc.weight: (out, in)).
    W1 = 0.1 * jax.random.normal(k1, (128, C), jnp.float32)
    b1 = 0.1 * jax.random.normal(k2, (128,), jnp.float32)
    W2 = 0.1 * jax.random.normal(k3, (NUM_CLASSES, 128), jnp.float32)
    b2 = 0.1 * jax.random.normal(k4, (NUM_CLASSES,), jnp.float32)

    params = dict(
        w1=W1.T,                                             # (64, 128)
        b1=b1.reshape(1, 128),
        w2p=jnp.zeros((128, PAD_CLASSES), jnp.float32)
               .at[:, :NUM_CLASSES].set(W2.T),               # lane-padded fc2
        b2p=jnp.zeros((1, PAD_CLASSES), jnp.float32)
               .at[0, :NUM_CLASSES].set(b2),
    )

    out_ct, out = projection_head_pallas(x, params)
    jax.block_until_ready((out_ct, out))

    ref_ct, ref_out = projection_head_ref(x, dict(W1=W1, b1=b1, W2=W2, b2=b2))
    assert out_ct.shape == (N, 128) and out.shape == (N, NUM_CLASSES)
    assert jnp.max(jnp.abs(out_ct - ref_ct)) < 1e-4, "out_ct mismatch"
    assert jnp.max(jnp.abs(out - ref_out)) < 1e-4, "out mismatch"

    print("KERNEL_OK")
</pallas_src>

<mosaic_0001>
module attributes {stable_mosaic.version = 11 : i64} {
  func.func @_projection_head_kernel(%arg0: i32, %arg1: memref<2x64x128xf32, #tpu.memory_space<vmem>>, %arg2: memref<64x128xf32, #tpu.memory_space<vmem>>, %arg3: memref<1x128xf32, #tpu.memory_space<vmem>>, %arg4: memref<128x128xf32, #tpu.memory_space<vmem>>, %arg5: memref<1x128xf32, #tpu.memory_space<vmem>>, %arg6: memref<2x128xf32, #tpu.memory_space<vmem>>, %arg7: memref<2x128xf32, #tpu.memory_space<vmem>>, %arg8: memref<2x128xf32, #tpu.memory_space<vmem>>) attributes {dimension_semantics = [#tpu.dimension_semantics<arbitrary>], iteration_bounds = array<i64: 2>, scalar_prefetch = 0 : i64, scratch_operands = 1 : i64, tpu.core_type = #tpu.core_type<tc>, window_params = [{transform_indices = @transform_0, window_bounds = array<i64: 2, 64, 128>}, {pipeline_mode = #tpu.pipeline_mode<synchronous>, transform_indices = @transform_1, window_bounds = array<i64: 64, 128>}, {pipeline_mode = #tpu.pipeline_mode<synchronous>, transform_indices = @transform_2, window_bounds = array<i64: 1, 128>}, {pipeline_mode = #tpu.pipeline_mode<synchronous>, transform_indices = @transform_3, window_bounds = array<i64: 128, 128>}, {pipeline_mode = #tpu.pipeline_mode<synchronous>, transform_indices = @transform_4, window_bounds = array<i64: 1, 128>}, {pipeline_mode = #tpu.pipeline_mode<synchronous>, transform_indices = @transform_5, window_bounds = array<i64: 2, 128>}, {pipeline_mode = #tpu.pipeline_mode<synchronous>, transform_indices = @transform_6, window_bounds = array<i64: 2, 128>}]} {
    %c0_i32 = arith.constant 0 : i32
    %0 = arith.cmpi eq, %arg0, %c0_i32 : i32
    %1 = arith.extui %0 : i1 to i32
    %c0_i32_0 = arith.constant 0 : i32
    %2 = arith.cmpi ne, %1, %c0_i32_0 : i32
    scf.if %2 {
      %cst_8 = arith.constant 0.000000e+00 : f32
      %11 = vector.broadcast %cst_8 : f32 to vector<2x128xf32>
      %c0_9 = arith.constant 0 : index
      %c0_10 = arith.constant 0 : index
      %12 = vector.load %arg8[%c0_9, %c0_10] : memref<2x128xf32, #tpu.memory_space<vmem>>, vector<2x128xf32>
      tpu.vector_store %arg8[%c0_9, %c0_10], %11 {strides = array<i32>} : memref<2x128xf32, #tpu.memory_space<vmem>>, vector<2x128xf32>,
    } else {
    }
    %c0 = arith.constant 0 : index
    %c0_1 = arith.constant 0 : index
    %3 = vector.load %arg8[%c0, %c0_1] : memref<2x128xf32, #tpu.memory_space<vmem>>, vector<2x128xf32>
    %c0_2 = arith.constant 0 : index
    %c0_3 = arith.constant 0 : index
    %c0_4 = arith.constant 0 : index
    %4 = vector.load %arg1[%c0_2, %c0_3, %c0_4] : memref<2x64x128xf32, #tpu.memory_space<vmem>>, vector<2x64x128xf32>
    %cst = arith.constant dense<0.000000e+00> : vector<2x128xf32>
    %5 = vector.multi_reduction <add>, %4, %cst [1] : vector<2x64x128xf32> to vector<2x128xf32>
    %6 = arith.addf %3, %5 : vector<2x128xf32>
    %c0_5 = arith.constant 0 : index
    %c0_6 = arith.constant 0 : index
    %7 = vector.load %arg8[%c0_5, %c0_6] : memref<2x128xf32, #tpu.memory_space<vmem>>, vector<2x128xf32>
    tpu.vector_store %arg8[%c0_5, %c0_6], %6 {strides = array<i32>} : memref<2x128xf32, #tpu.memory_space<vmem>>, vector<2x128xf32>,
    %c1_i32 = arith.constant 1 : i32
    %8 = arith.cmpi eq, %arg0, %c1_i32 : i32
    %9 = arith.extui %8 : i1 to i32
    %c0_i32_7 = arith.constant 0 : i32
    %10 = arith.cmpi ne, %9, %c0_i32_7 : i32
    scf.if %10 {
      %c0_8 = arith.constant 0 : index
      %c0_9 = arith.constant 0 : index
      %11 = vector.load %arg8[%c0_8, %c0_9] : memref<2x128xf32, #tpu.memory_space<vmem>>, vector<2x64xf32>
      %c0_10 = arith.constant 0 : index
      %c64 = arith.constant 64 : index
      %12 = vector.load %arg8[%c0_10, %c64] : memref<2x128xf32, #tpu.memory_space<vmem>>, vector<2x64xf32>
      %13 = arith.addf %11, %12 : vector<2x64xf32>
      %cst_11 = arith.constant 3.906250e-03 : f32
      %14 = vector.broadcast %cst_11 : f32 to vector<2x64xf32>
      %15 = arith.mulf %13, %14 : vector<2x64xf32>
      %c0_12 = arith.constant 0 : index
      %c0_13 = arith.constant 0 : index
      %16 = vector.load %arg2[%c0_12, %c0_13] : memref<64x128xf32, #tpu.memory_space<vmem>>, vector<64x128xf32>
      %cst_14 = arith.constant dense<0.000000e+00> : vector<2x128xf32>
      %17 = tpu.matmul %15, %16, %cst_14 {dimension_numbers = #tpu.dot_dimension_numbers<[1], [0], [0], [1], [0, 0, 1, 1], [], []>} : vector<2x64xf32>, vector<64x128xf32>, vector<2x128xf32> -> vector<2x128xf32>
      %c0_15 = arith.constant 0 : index
      %c0_16 = arith.constant 0 : index
      %18 = vector.load %arg3[%c0_15, %c0_16] : memref<1x128xf32, #tpu.memory_space<vmem>>, vector<1x128xf32>
      %19 = vector.broadcast %18 : vector<1x128xf32> to vector<2x128xf32>
      %20 = arith.addf %17, %19 : vector<2x128xf32>
      %c0_17 = arith.constant 0 : index
      %c0_18 = arith.constant 0 : index
      %21 = vector.load %arg6[%c0_17, %c0_18] : memref<2x128xf32, #tpu.memory_space<vmem>>, vector<2x128xf32>
      tpu.vector_store %arg6[%c0_17, %c0_18], %20 {strides = array<i32>} : memref<2x128xf32, #tpu.memory_space<vmem>>, vector<2x128xf32>,
      %cst_19 = arith.constant 0.000000e+00 : f32
      %22 = vector.broadcast %cst_19 : f32 to vector<2x128xf32>
      %23 = arith.maximumf %20, %22 : vector<2x128xf32>
      %c0_20 = arith.constant 0 : index
      %c0_21 = arith.constant 0 : index
      %24 = vector.load %arg4[%c0_20, %c0_21] : memref<128x128xf32, #tpu.memory_space<vmem>>, vector<128x128xf32>
      %cst_22 = arith.constant dense<0.000000e+00> : vector<2x128xf32>
      %25 = tpu.matmul %23, %24, %cst_22 {dimension_numbers = #tpu.dot_dimension_numbers<[1], [0], [0], [1], [0, 0, 1, 1], [], []>} : vector<2x128xf32>, vector<128x128xf32>, vector<2x128xf32> -> vector<2x128xf32>
      %c0_23 = arith.constant 0 : index
      %c0_24 = arith.constant 0 : index
      %26 = vector.load %arg5[%c0_23, %c0_24] : memref<1x128xf32, #tpu.memory_space<vmem>>, vector<1x128xf32>
      %27 = vector.broadcast %26 : vector<1x128xf32> to vector<2x128xf32>
      %28 = arith.addf %25, %27 : vector<2x128xf32>
      %c0_25 = arith.constant 0 : index
      %c0_26 = arith.constant 0 : index
      %29 = vector.load %arg7[%c0_25, %c0_26] : memref<2x128xf32, #tpu.memory_space<vmem>>, vector<2x128xf32>
      tpu.vector_store %arg7[%c0_25, %c0_26], %28 {strides = array<i32>} : memref<2x128xf32, #tpu.memory_space<vmem>>, vector<2x128xf32>,
    } else {
    }
    return
  }
  func.func @transform_0(%arg0: i32) -> (i32, i32, i32) {
    %c0_i32 = arith.constant 0 : i32
    %c0_i32_0 = arith.constant 0 : i32
    %c0_i32_1 = arith.constant 0 : i32
    return %c0_i32, %arg0, %c0_i32_0 : i32, i32, i32
  }
  func.func @transform_1(%arg0: i32) -> (i32, i32) {
    %c0_i32 = arith.constant 0 : i32
    %c0_i32_0 = arith.constant 0 : i32
    %c0_i32_1 = arith.constant 0 : i32
    return %c0_i32, %c0_i32_0 : i32, i32
  }
  func.func @transform_2(%arg0: i32) -> (i32, i32) {
    %c0_i32 = arith.constant 0 : i32
    %c0_i32_0 = arith.constant 0 : i32
    %c0_i32_1 = arith.constant 0 : i32
    return %c0_i32, %c0_i32_0 : i32, i32
  }
  func.func @transform_3(%arg0: i32) -> (i32, i32) {
    %c0_i32 = arith.constant 0 : i32
    %c0_i32_0 = arith.constant 0 : i32
    %c0_i32_1 = arith.constant 0 : i32
    return %c0_i32, %c0_i32_0 : i32, i32
  }
  func.func @transform_4(%arg0: i32) -> (i32, i32) {
    %c0_i32 = arith.constant 0 : i32
    %c0_i32_0 = arith.constant 0 : i32
    %c0_i32_1 = arith.constant 0 : i32
    return %c0_i32, %c0_i32_0 : i32, i32
  }
  func.func @transform_5(%arg0: i32) -> (i32, i32) {
    %c0_i32 = arith.constant 0 : i32
    %c0_i32_0 = arith.constant 0 : i32
    %c0_i32_1 = arith.constant 0 : i32
    return %c0_i32, %c0_i32_0 : i32, i32
  }
  func.func @transform_6(%arg0: i32) -> (i32, i32) {
    %c0_i32 = arith.constant 0 : i32
    %c0_i32_0 = arith.constant 0 : i32
    %c0_i32_1 = arith.constant 0 : i32
    return %c0_i32, %c0_i32_0 : i32, i32
  }
}

</mosaic_0001>

<bundles_post_ra>
// kernel: tpu_custom_call.1
= control target key start
LH: loop header
LB: loop body
LE: loop exit
PB: predicated region body
PF: predicated region fallthrough
CT: control target
= control target key end

     0   :  { %12 = vsyncpa [#allocation4], 0  ;;  %s1329_s0 = inlined_call_operand.hbm [shape: f32[2,128,128], index: 0, kind: input, shape index: {}]   ;;  %s1330_s1 = inlined_call_operand.hbm [shape: f32[64,128], index: 1, kind: input, shape index: {}]   ;;  %s1331_s2 = inlined_call_operand.vmem [shape: f32[1,128], index: 2, kind: input, shape index: {}]   ;;  %s1332_s3 = inlined_call_operand.hbm [shape: f32[128,128], index: 3, kind: input, shape index: {}]   ;;  %s1333_s4 = inlined_call_operand.vmem [shape: f32[1,128], index: 4, kind: input, shape index: {}]   ;;  %s1334_s5 = inlined_call_operand.hbm [shape: f32[2,128], index: 5, kind: output, shape index: {0}]   ;;  %s1335_s6 = inlined_call_operand.hbm [shape: f32[2,128], index: 6, kind: output, shape index: {1}]  }
   0x1   :  { %14 = vsyncpa [#allocation4 + $0x1], 0 }
   0x2   :  { %15 = vsyncpa [#allocation7], 0 }
   0x3   :  { %16 = vsyncpa [#allocation5], 0 }
   0x4   :  { %17 = vsyncpa [#allocation11], 0  ;;  %s1098_s21 = smov 0   ;;  %s1100_s22 = smov 0  }
   0x5   :  { %s1102_s23 = smov 0   ;;  %s1104_s24 = smov 0  }
   0x6 LB: > { %s1117_s25 = sadd.s32 4294967295, %s1045_s24   ;;  %s1120_s26 = sadd.s32 1, %s1045_s24   ;;  %s1045_s24 = sphi %s1104_s24, %s1353_s24   ;;  %s1041_s23 = sphi %s1102_s23, %s1352_s23   ;;  %s1037_s22 = sphi %s1100_s22, %s1351_s22   ;;  %s1033_s21 = sphi %s1098_s21, %s1350_s21  }
   0x7   : > { %s27_s27 = ssub.s32 %s1045_s24, %s1120_s26  ;;  %s30_s28 = sadd.s32 1, %s1041_s23 }
   0x8   : > { %p28_p0 = scmp.eq.s32.totalorder %s27_s27, 0  ;;  %p37_p1 = scmp.ne.s32.totalorder %s1041_s23, %s1037_s22 }
   0x9   : > { %p38_p2 = scmp.eq.s32.totalorder %s1045_s24, 0  ;;  %p43_p3 = scmp.ne.s32.totalorder %s1037_s22, %s1033_s21 }
   0xa   : > { %s1130_s29 = scalar_select %p28_p0, %s1041_s23, %s30_s28  }
   0xb   : > { %p1132_p4 = por %p38_p2, %p37_p1  ;;  %p1336_p5 = scmp.eq.s32.totalorder %s1117_s25, 0 }
   0xc   : > { %p662_p6 = scmp.ge.s32.totalorder %s1045_s24, 1  ;;  %p180_p7 = scmp.lt.s32.totalorder %s1045_s24, 3 }
   0xd   : > { %s1340_s30 = scalar_select %p1132_p4, 1, 0 }
   0xe   : > { %p1141_p8 = por %p1336_p5, %p43_p3  ;;  %p1146_p10 = pnand %p662_p6, %p180_p7 }
   0xf   : > { %s1047_s9 = smov [#allocation6]   ;;  %s1048_s12 = smov [#allocation8]  }
  0x10   : > { %s1341_s7 = scalar_select %p1141_p8, 1, 0 }
  0x11   : > { %s1342_s8 = scalar_select %p1146_p10, 1, 0 }
  0x12   : > { %s192_s10 = sshll.u32 %s1047_s9, 4  ;;  %p828_p11 = pneg %p1146_p10  ;;  %s193_s10 = int_to_ptr.vmem [resolvable:$true] %s192_s10 }
  0x13   : > { %s208_s13 = sshll.u32 %s1048_s12, 4  ;;  %s891_s16 = scalar_lea.hbm %s1330_s1, 1024  ;;  %s1158_s13 = int_to_ptr.vmem [resolvable:$true] %s208_s13 }
  0x14   : > { %p1154_p12 = pnand %p828_p11, %p1336_p5  ;;  %p892_p13 = scmp.ne.s32.totalorder %s1330_s1, %s891_s16 }
  0x15   : > { %p898_p3 = scmp.lt.u32.totalorder %s891_s16, %s1330_s1 }
  0x16   : > { %p893_p0 = pneg %p1154_p12 }
  0x18   : > { %p894_p1 = pnand %p893_p0, %p892_p13 }
  0x1a   : > { %p895_p2 = pneg %p894_p1 }
  0x1c   : > { %p900_p6 = pnand %p898_p3, %p895_p2 }
  0x1e   : > { %903 = shalt.err (!%p900_p6)
}
  0x1f   : > { %s904_s21 = scalar_lea.vmem %s193_s10, 1024  ;;  %p912_p5 = scmp.lt.s32.totalorder %s193_s10, %s193_s10 }
  0x20   : > { %p905_p7 = scmp.ne.s32.totalorder %s193_s10, %s904_s21  ;;  %p913_p8 = scmp.lt.s32.totalorder %s904_s21, %s904_s21 }
  0x22   : > { %p907_p11 = pnand %p905_p7, %p893_p0  ;;  %p914_p10 = por %p913_p8, %p912_p5 }
  0x24   : > { %p908_p9 = pneg %p907_p11 }
  0x26   : > { %p915_p4 = pnand %p914_p10, %p908_p9 }
  0x28   : > { %918 = shalt.err (!%p915_p4)
}
  0x29   : > { %s1049_s27 = smov 128   ;;  %s1050_s28 = smov 8  }
  0x2a   : > { %831 = dma.hbm_to_vmem [thread:$0]  (!%p1154_p12), %s1330_s1, 1024, %s193_s10, [#allocation7], %s1049_s27, %s1049_s27, %s1050_s28  }
  0x2b   : > { %s919_s16 = scalar_lea.hbm %s1332_s3, 2048 }
  0x2c   : > { %p920_p13 = scmp.ne.s32.totalorder %s1332_s3, %s919_s16  ;;  %p926_p8 = scmp.lt.u32.totalorder %s919_s16, %s1332_s3 }
  0x2e   : > { %p922_p4 = pnand %p920_p13, %p893_p0 }
  0x30   : > { %p923_p5 = pneg %p922_p4 }
  0x32   : > { %p928_p9 = pnand %p926_p8, %p923_p5 }
  0x34   : > { %931 = shalt.err (!%p928_p9)
}
  0x35   : > { %s932_s10 = scalar_lea.vmem %s1158_s13, 2048  ;;  %p940_p3 = scmp.lt.s32.totalorder %s1158_s13, %s1158_s13 }
  0x36   : > { %p933_p10 = scmp.ne.s32.totalorder %s1158_s13, %s932_s10  ;;  %p941_p6 = scmp.lt.s32.totalorder %s932_s10, %s932_s10 }
  0x38   : > { %p935_p1 = pnand %p933_p10, %p893_p0  ;;  %p942_p7 = por %p941_p6, %p940_p3 }
  0x3a   : > { %p936_p2 = pneg %p935_p1 }
  0x3c   : > { %p943_p11 = pnand %p942_p7, %p936_p2 }
  0x3e   : > { %946 = shalt.err (!%p943_p11)
}
  0x3f   : > { %834 = dma.hbm_to_vmem [thread:$0]  (!%p1154_p12), %s1332_s3, 2048, %s1158_s13, [#allocation7], %s1049_s27, %s1049_s27, %s1050_s28  }
  0x40   : > { %p665_p13 = scmp.ge.s32.totalorder %s1045_s24, 2 }
  0x42   : > { %221 = sbr.rel (%p665_p13) target bundleno = 87 (0x57), region = 32 }
  0x49   : > { %s225_s12 = sand.u32 1, %s1041_s23   ;;  %s686_s15 = sshll.u32 %s1045_s24, 10 }
  0x4a   : > { %s666_s14 = sshll.u32 %s225_s12, 7  ;;  %p1344_p0 = scmp.ne.s32.totalorder %s1340_s30, 0 }
  0x4b   : > { %s235_s13 = scalar_lea.hbm %s1329_s0, %s686_s15  ;;  %s229_s28 = scalar_lea.vmem [#allocation3], %s666_s14 }
  0x4c   : > { %s807_s11 = scalar_select %p1344_p0, [#allocation0], [#allocation14] }
  0x4d   : > { %s248_s18 = sshll.u32 %s229_s28, 4  ;;  %s1051_s19 = smov 2048   ;;  %s249_s18 = int_to_ptr.vmem [resolvable:$true] %s248_s18 }
  0x4e   : > { %s240_s27 = sld [smem:[%s807_s11]]   ;;  %s1052_s20 = smov 1024  }
  0x4f   : > { %808 = sst [smem:[#allocation13]] (%p1344_p0), %s1051_s19  ;;  %s1053_s10 = smov 8  }
  0x50   : > { %809 = sst [smem:[#allocation13 + $0x1]] (%p1344_p0), %s1052_s20  ;;  %s1054_s24 = smov 128  }
  0x51   : > { %810 = sst [smem:[#allocation13 + $0x2]] (%p1344_p0), %s1053_s10  ;;  %s226_s14 = scalar_lea.sflag [#allocation4], %s225_s12 }
  0x52   : > { %811 = sst [smem:[#allocation13 + $0x3]] (%p1344_p0), %s1054_s24  ;;  %s1055_s15 = smov [#allocation12]  }
  0x53   : > { %812 = sst [smem:[#allocation13 + $0x4]] (%p1344_p0), %s1054_s24 }
  0x54   : > { %s669_s21 = sshll.u32 %s240_s27, 26  ;;  %813 = sst [smem:[#allocation13 + $0x5]] (%p1344_p0), %s1053_s10 }
  0x55   : > { %s670_s9 = sadd.s32 134217728, %s669_s21 }
  0x56   : > { %814 = dma.general (%p1344_p0), %s235_s13, 2048, %s249_s18, %s226_s14, %s1055_s15, [#allocation13], %s670_s9, 0  }
  0x57 PF: > { %p1345_p12 = scmp.ne.s32.totalorder %s1342_s8, 0 }
  0x58   : > { %s275_s11 = sand.u32 (!%p1345_p12), 1, %s1037_s22   ;;  %p1346_p4 = scmp.ne.s32.totalorder (!%p1345_p12), %s1341_s7, 0 }
  0x59   : > { %273 = sbr.rel (%p1345_p12) target bundleno = 746 (0x2ea), region = 40  ;;  %s672_s16 = sshll.u32 (!%p1345_p12), %s275_s11, 7 }
  0x5a   : > { %s276_s17 = scalar_lea.sflag (!%p1345_p12), [#allocation4], %s275_s11  ;;  %s1232_s28 = scalar_lea.vmem (!%p1345_p12), [#allocation3], %s672_s16 }
  0x60   : > { %1016 = dma.done.wait (%p1346_p4), %s276_s17, 2048  }
  0x61   : > { %1018 = vsyncadd (%p1346_p4), %s276_s17, 4294965248  ;;  %p1347_p5 = scmp.eq.s32.totalorder %s1117_s25, 0 }
  0x63   : > { %1020 = dma.done.wait (%p1347_p5), [#allocation7], 3072   ;;  %p1348_p8 = pmov %p1347_p5 }
  0x64   : > { %p1349_p9 = scmp.ne.s32.totalorder %s1117_s25, 0 }
  0x65   : > { %1022 = vsyncadd (%p1348_p8), [#allocation7], 4294964224  ;;  %v1056_v0 = vmov (!%p1349_p9), 0.0  }
  0x66   : > { %315 = sbr.rel (%p1349_p9) target bundleno = 109 (0x6d), region = 56  ;;  %316 = vst [vmem:[#allocation2] sm:$0x3] (!%p1349_p9), %v1056_v0 }
  0x6d PF: > { %v318_v1 = vld [vmem:[%s1232_s28] sm:$0xff]  ;;  %v319_v2 = vld [vmem:[%s1232_s28 + $0x8] sm:$0xff]  ;;  %v320_v3 = vld [vmem:[%s1232_s28 + $0x10] sm:$0xff]  ;;  %vm362_vm0 = vcmask 1041409   ;;  %p676_p10 = scmp.ne.s32.totalorder %s1117_s25, 1 }
  0x6e   : > { %v334_v4 = vadd.f32 %v319_v2, %v318_v1  ;;  %v321_v5 = vld [vmem:[%s1232_s28 + $0x18] sm:$0xff]  ;;  %v326_v6 = vld [vmem:[%s1232_s28 + $0x40] sm:$0xff]  ;;  %v327_v7 = vld [vmem:[%s1232_s28 + $0x48] sm:$0xff]  ;;  %s1057_s30 = smov (!%p676_p10), 64   ;;  %v1058_v49 = vmov (!%p676_p10), 0.0|0.0   ;;  %vm1059_vm1 = vmmov (!%p676_p10), 0  }
  0x6f   : > { %v328_v8 = vld [vmem:[%s1232_s28 + $0x50] sm:$0xff]  ;;  %v322_v10 = vld [vmem:[%s1232_s28 + $0x20] sm:$0xff]  ;;  %v347_v11 = vadd.f32 %v327_v7, %v326_v6  ;;  %v329_v12 = vld [vmem:[%s1232_s28 + $0x58] sm:$0xff]  ;;  %767 = vmatprep.subr.bf16.mxu0 (!%p676_p10), %v1058_v49  ;;  %v1060_v53 = vmov (!%p676_p10), 0.0   ;;  %779 = vmatprep.subr.bf16.mxu1 (!%p676_p10), %v1058_v49  ;;  %vm393_vm2 = vcmask (!%p676_p10), 523264  }
  0x70   : > { %v335_v9 = vadd.f32 %v334_v4, %v320_v3  ;;  %v323_v14 = vld [vmem:[%s1232_s28 + $0x28] sm:$0xff]  ;;  %v330_v16 = vld [vmem:[%s1232_s28 + $0x60] sm:$0xff]  ;;  %v324_v18 = vld [vmem:[%s1232_s28 + $0x30] sm:$0xff]  ;;  %729 = vmatprep.mubr.msk.f32.mxu0 (!%p676_p10), %vm1059_vm1, %v1060_v53  ;;  %764 = vmatprep.mubr.msk.f32.mxu1 (!%p676_p10), %vm1059_vm1, %v1060_v53 }
  0x71   : > { %v348_v15 = vadd.f32 %v347_v11, %v328_v8  ;;  %v331_v20 = vld [vmem:[%s1232_s28 + $0x68] sm:$0xff]  ;;  %v325_v22 = vld [vmem:[%s1232_s28 + $0x38] sm:$0xff]  ;;  %v332_v24 = vld [vmem:[%s1232_s28 + $0x70] sm:$0xff] }
  0x72   : > { %v336_v13 = vadd.f32 %v335_v9, %v321_v5  ;;  %v333_v27 = vld [vmem:[%s1232_s28 + $0x78] sm:$0xff]  ;;  %v378_v47 = vld [vmem:[#allocation6] sm:$0xff] (!%p676_p10)  ;;  %v379_v48 = vld [vmem:[#allocation6 + $0x8] sm:$0xff] (!%p676_p10) }
  0x73   : > { %v349_v19 = vadd.f32 %v348_v15, %v329_v12  ;;  %v317_v42 = vld [vmem:[#allocation2] sm:$0x3]  ;;  %v768_v50 = vpack.c.bf16 (!%p676_p10), %v379_v48, %v378_v47  ;;  %v380_v51 = vld [vmem:[#allocation6 + $0x10] sm:$0xff] (!%p676_p10)  ;;  %v469_v55 = vld [vmem:[#allocation8] sm:$0xff] (!%p676_p10) }
  0x74   : > { %v337_v17 = vadd.f32 %v336_v13, %v322_v10  ;;  %v381_v52 = vld [vmem:[#allocation6 + $0x18] sm:$0xff] (!%p676_p10)  ;;  %v470_v56 = vld [vmem:[#allocation8 + $0x8] sm:$0xff] (!%p676_p10)  ;;  %v471_v57 = vld [vmem:[#allocation8 + $0x10] sm:$0xff] (!%p676_p10) }
  0x75   : > { %v350_v23 = vadd.f32 %v349_v19, %v330_v16  ;;  %769 = vmatpush3.bf16.msra.mxu0 (!%p676_p10), %v768_v50  ;;  %v771_v54 = vpack.c.bf16 (!%p676_p10), %v381_v52, %v380_v51  ;;  %v382_v58 = vld [vmem:[#allocation6 + $0x20] sm:$0xff] (!%p676_p10)  ;;  %v383_v59 = vld [vmem:[#allocation6 + $0x28] sm:$0xff] (!%p676_p10)  ;;  %v780_v60 = vpack.c.bf16 (!%p676_p10), %v470_v56, %v469_v55  ;;  %v472_v61 = vld [vmem:[#allocation8 + $0x18] sm:$0xff] (!%p676_p10) }
  0x76   : > { %v338_v21 = vadd.f32 %v337_v17, %v323_v14  ;;  %770 = vmatprep.subr.bf16.mxu0 (!%p676_p10), %v1058_v49  ;;  %v783_v62 = vpack.c.bf16 (!%p676_p10), %v472_v61, %v471_v57  ;;  %v774_v63 = vpack.c.bf16 (!%p676_p10), %v383_v59, %v382_v58  ;;  %v473_v0 = vld [vmem:[#allocation8 + $0x20] sm:$0xff] (!%p676_p10)  ;;  %v474_v1 = vld [vmem:[#allocation8 + $0x28] sm:$0xff] (!%p676_p10)  ;;  %v384_v2 = vld [vmem:[#allocation6 + $0x30] sm:$0xff] (!%p676_p10) }
  0x77   : > { %v351_v26 = vadd.f32 %v350_v23, %v331_v20  ;;  %781 = vmatpush3.bf16.msra.mxu1 (!%p676_p10), %v780_v60  ;;  %v385_v3 = vld [vmem:[#allocation6 + $0x38] sm:$0xff] (!%p676_p10)  ;;  %v786_v4 = vpack.c.bf16 (!%p676_p10), %v474_v1, %v473_v0  ;;  %v475_v6 = vld [vmem:[#allocation8 + $0x30] sm:$0xff] (!%p676_p10)  ;;  %v477_v9 = vld [vmem:[#allocation8 + $0x40] sm:$0xff] (!%p676_p10) }
  0x78   : > { %v339_v25 = vadd.f32 %v338_v21, %v324_v18  ;;  %782 = vmatprep.subr.bf16.mxu1 (!%p676_p10), %v1058_v49  ;;  %v777_v5 = vpack.c.bf16 (!%p676_p10), %v385_v3, %v384_v2  ;;  %v476_v7 = vld [vmem:[#allocation8 + $0x38] sm:$0xff] (!%p676_p10)  ;;  %v478_v10 = vld [vmem:[#allocation8 + $0x48] sm:$0xff] (!%p676_p10)  ;;  %v479_v12 = vld [vmem:[#allocation8 + $0x50] sm:$0xff] (!%p676_p10) }
  0x79   : > { %v352_v29 = vadd.f32 %v351_v26, %v332_v24  ;;  %772 = vmatpush3.bf16.msra.mxu0 (!%p676_p10), %v771_v54  ;;  %v789_v8 = vpack.c.bf16 (!%p676_p10), %v476_v7, %v475_v6  ;;  %v792_v11 = vpack.c.bf16 (!%p676_p10), %v478_v10, %v477_v9  ;;  %v480_v13 = vld [vmem:[#allocation8 + $0x58] sm:$0xff] (!%p676_p10)  ;;  %v481_v15 = vld [vmem:[#allocation8 + $0x60] sm:$0xff] (!%p676_p10)  ;;  %v482_v16 = vld [vmem:[#allocation8 + $0x68] sm:$0xff] (!%p676_p10) }
  0x7a   : > { %v340_v28 = vadd.f32 %v339_v25, %v325_v22  ;;  %773 = vmatprep.subr.bf16.mxu0 (!%p676_p10), %v1058_v49  ;;  %v795_v14 = vpack.c.bf16 (!%p676_p10), %v480_v13, %v479_v12  ;;  %v798_v17 = vpack.c.bf16 (!%p676_p10), %v482_v16, %v481_v15  ;;  %v483_v21 = vld [vmem:[#allocation8 + $0x70] sm:$0xff] (!%p676_p10)  ;;  %v484_v22 = vld [vmem:[#allocation8 + $0x78] sm:$0xff] (!%p676_p10) }
  0x7b   : > { %v353_v31 = vadd.f32 %v352_v29, %v333_v27  ;;  %784 = vmatpush3.bf16.msra.mxu1 (!%p676_p10), %v783_v62  ;;  %v801_v23 = vpack.c.bf16 (!%p676_p10), %v484_v22, %v483_v21  ;;  %v677_v24 = vld [vmem:[%s1331_s2] ss:$0 sm:$0xff] (!%p676_p10) }
  0x7c   : > { %v341_v30 = vrot.slane %v340_v28, 4  ;;  %785 = vmatprep.subr.bf16.mxu1 (!%p676_p10), %v1058_v49  ;;  %v679_v29 = vld [vmem:[%s1333_s4] ss:$0 sm:$0xff] (!%p676_p10) }
  0x7d   : > { %v354_v33 = vrot.slane %v353_v31, 4  ;;  %775 = vmatpush3.bf16.msra.mxu0 (!%p676_p10), %v774_v63 }
  0x7e   : > { %v342_v32 = vadd.f32 %v341_v30, %v340_v28  ;;  %776 = vmatprep.subr.bf16.mxu0 (!%p676_p10), %v1058_v49 }
  0x7f   : > { %v355_v35 = vadd.f32 %v354_v33, %v353_v31  ;;  %787 = vmatpush3.bf16.msra.mxu1 (!%p676_p10), %v786_v4 }
  0x80   : > { %v343_v34 = vrot.slane %v342_v32, 2  ;;  %788 = vmatprep.subr.bf16.mxu1 (!%p676_p10), %v1058_v49 }
  0x81   : > { %v356_v37 = vrot.slane %v355_v35, 2  ;;  %778 = vmatpush3.bf16.msra.mxu0 (!%p676_p10), %v777_v5 }
  0x82   : > { %v344_v36 = vadd.f32 %v343_v34, %v342_v32 }
  0x83   : > { %v357_v39 = vadd.f32 %v356_v37, %v355_v35  ;;  %790 = vmatpush3.bf16.msra.mxu1 (!%p676_p10), %v789_v8 }
  0x84   : > { %v345_v38 = vrot.slane %v344_v36, 1  ;;  %791 = vmatprep.subr.bf16.mxu1 (!%p676_p10), %v1058_v49 }
  0x85   : > { %v358_v41 = vrot.slane %v357_v39, 1 }
  0x86   : > { %v346_v40 = vadd.f32 %v345_v38, %v344_v36  ;;  %370 = sbr.rel (%p676_p10) target bundleno = 698 (0x2ba), region = 60 }
  0x87   : > { %v359_v43 = vadd.f32 %v358_v41, %v357_v39  ;;  %793 = vmatpush3.bf16.msra.mxu1 (!%p676_p10), %v792_v11 }
  0x88   : > { %794 = vmatprep.subr.bf16.mxu1 (!%p676_p10), %v1058_v49 }
  0x89   : > { %v363_v44 = vsel %vm362_vm0, %v359_v43, %v346_v40 }
  0x8a   : > { %v365_v45 = vadd.f32 %v363_v44, %v317_v42 }
  0x8b   : > { %796 = vmatpush3.bf16.msra.mxu1 (!%p676_p10), %v795_v14 }
  0x8c   : > { %366 = vst [vmem:[#allocation2] sm:$0x3] %v365_v45  ;;  %797 = vmatprep.subr.bf16.mxu1 (!%p676_p10), %v1058_v49 }
  0x8f   : > { %799 = vmatpush3.bf16.msra.mxu1 %v798_v17 }
  0x90   : > { %800 = vmatprep.subr.bf16.mxu1 %v1058_v49 }
  0x93   : > { %v1261_v46 = vld [vmem:[#allocation2] sm:$0x3]  ;;  %802 = vmatpush3.bf16.msra.mxu1 %v801_v23 }
  0x94   : > { %373 = vrot.lane.b32.xlu0 %v1261_v46, %s1057_s30 }
 0x106   : > { %v374_v18 = vpop.permute.xlu0 %373 }
 0x107   : > { %v376_v19 = vadd.f32 %v374_v18, %v1261_v46 }
 0x109   : > { %v377_v20 = vmul.f32 0.00390625, %v376_v19 }
 0x10b   : > { %730 = vmatmul.mubr.msk.f32.vlgmr.msra.gmra.mrb[0].mxu0 %vm393_vm2, %v377_v20 }
 0x1de   : > { %v463_v25 = vpop.f32.mrb[0].mxu0 }
 0x1df   : > { %v464_v26 = vadd.f32 %v677_v24, %v463_v25  ;;  %v731_v27 = vpop.f32.mrb[1].mxu0 }
 0x1e1   : > { %467 = vst [vmem:[#allocation9] sm:$0x3] %v464_v26  ;;  %v468_v28 = vmax.f32 %v464_v26, 0.0 }
 0x1e3   : > { %765 = vmatmul.mubr.f32.vlgmr.msra.gmra.mrb[0].mxu1 %v468_v28 }
 0x2b6   : > { %v558_v30 = vpop.f32.mrb[0].mxu1 }
 0x2b7   : > { %v559_v31 = vadd.f32 %v679_v29, %v558_v30  ;;  %v766_v32 = vpop.f32.mrb[1].mxu1 }
 0x2b9   : > { %562 = vst [vmem:[#allocation10] sm:$0x3] %v559_v31 }
 0x2ba PF: > { %p839_p1 = scmp.eq.s32.totalorder %s1117_s25, 1  ;;  %s1061_s27 = smov [#allocation9]  }
 0x2bb   : > { %s570_s18 = sshll.u32 %s1061_s27, 4  ;;  %s1062_s19 = smov [#allocation10]   ;;  %s571_s18 = int_to_ptr.vmem [resolvable:$true] %s570_s18 }
 0x2bc   : > { %s581_s20 = sshll.u32 %s1062_s19, 4  ;;  %s947_s10 = scalar_lea.vmem %s571_s18, 32  ;;  %s582_s20 = int_to_ptr.vmem [resolvable:$true] %s581_s20 }
 0x2bd   : > { %p948_p2 = scmp.ne.s32.totalorder %s571_s18, %s947_s10  ;;  %p954_p7 = scmp.lt.s32.totalorder %s571_s18, %s571_s18 }
 0x2be   : > { %p955_p11 = scmp.lt.s32.totalorder %s947_s10, %s947_s10 }
 0x2bf   : > { %p949_p3 = pnand %p948_p2, %p839_p1 }
 0x2c0   : > { %p956_p13 = por %p955_p11, %p954_p7 }
 0x2c1   : > { %p950_p6 = pneg %p949_p3 }
 0x2c3   : > { %p957_p0 = pnand %p956_p13, %p950_p6 }
 0x2c5   : > { %960 = shalt.err (!%p957_p0)
}
 0x2c6   : > { %s961_s9 = scalar_lea.hbm %s1334_s5, 32 }
 0x2c7   : > { %p962_p12 = scmp.ne.s32.totalorder %s1334_s5, %s961_s9  ;;  %p967_p8 = scmp.lt.u32.totalorder %s961_s9, %s1334_s5 }
 0x2c9   : > { %p963_p4 = pnand %p962_p12, %p839_p1 }
 0x2cb   : > { %p964_p5 = pneg %p963_p4 }
 0x2cd   : > { %p969_p9 = pnand %p967_p8, %p964_p5 }
 0x2cf   : > { %972 = shalt.err (!%p969_p9)
}
 0x2d0   : > { %821 = dma.vmem_to_hbm [thread:$0]  (%p839_p1), %s571_s18, 32, %s1334_s5, [#allocation5]  }
 0x2d1   : > { %s973_s30 = scalar_lea.vmem %s582_s20, 32  ;;  %p980_p6 = scmp.lt.s32.totalorder %s582_s20, %s582_s20 }
 0x2d2   : > { %p974_p10 = scmp.ne.s32.totalorder %s582_s20, %s973_s30  ;;  %p981_p7 = scmp.lt.s32.totalorder %s973_s30, %s973_s30 }
 0x2d4   : > { %p975_p2 = pnand %p974_p10, %p839_p1  ;;  %p982_p11 = por %p981_p7, %p980_p6 }
 0x2d6   : > { %p976_p3 = pneg %p975_p2 }
 0x2d8   : > { %p983_p13 = pnand %p982_p11, %p976_p3 }
 0x2da   : > { %986 = shalt.err (!%p983_p13)
}
 0x2db   : > { %s987_s12 = scalar_lea.hbm %s1335_s6, 32 }
 0x2dc   : > { %p988_p0 = scmp.ne.s32.totalorder %s1335_s6, %s987_s12  ;;  %p993_p5 = scmp.lt.u32.totalorder %s987_s12, %s1335_s6 }
 0x2de   : > { %p989_p12 = pnand %p988_p0, %p839_p1 }
 0x2e0   : > { %p990_p4 = pneg %p989_p12 }
 0x2e2   : > { %p995_p8 = pnand %p993_p5, %p990_p4 }
 0x2e4   : > { %998 = shalt.err (!%p995_p8)
}
 0x2e5   : > { %823 = dma.vmem_to_hbm [thread:$0]  (%p839_p1), %s582_s20, 32, %s1335_s6, [#allocation11]  }
 0x2e6   : > { %1024 = dma.done.wait (%p839_p1), [#allocation5], 32  }
 0x2e7   : > { %1026 = vsyncadd (%p839_p1), [#allocation5], 4294967264 }
 0x2e8   : > { %1028 = dma.done.wait (%p839_p1), [#allocation11], 32  }
 0x2e9   : > { %1030 = vsyncadd (%p839_p1), [#allocation11], 4294967264 }
 0x2ea PF: > { %p20_p9 = scmp.ge.s32.totalorder %s1120_s26, 4   ;;  %s1350_s21 = smov %s1037_s22 }
 0x2eb   : > { %s1351_s22 = smov %s1041_s23  ;;  %s1352_s23 = smov %s1130_s29 }
 0x2ec   : > { %s1353_s24 = smov %s1120_s26  ;;  %22 = sbr.rel (!%p20_p9) target bundleno = 6 (0x6), region = 106 }
 0x2f3   :  { %598 = vsyncpa [#allocation4], 1 }
 0x2f4   :  { %600 = vsyncpa [#allocation4 + $0x1], 1 }
 0x2f5   :  { %601 = vsyncpa [#allocation7], 1 }
 0x2f6   :  { %602 = vsyncpa [#allocation5], 1 }
 0x2f7   :  { %604 = vsyncpa [#allocation5 + $0x1], 1 }
 0x2f8   :  { %605 = vsyncpa [#allocation11], 1 }

</bundles_post_ra>
